<compile_context>
chip_gen: v6e
topology: v6e:2x2x1
jax: 0.10.0
libtpu: 0.0.40
codegen_flags: <defaults>
</compile_context>

<pallas_src>
import math
from functools import partial

import jax
import jax.numpy as jnp
from jax import lax
from jax.experimental import pallas as pl
from jax.experimental.pallas import tpu as pltpu


# ------------------------------------------------------------------- linear kernel

def _linear_kernel(x_ref, w_ref, b_ref, o_ref):
    x = x_ref[...].astype(jnp.bfloat16)                    # bf16 operands, f32 accum
    o_ref[...] = (jnp.dot(x, w_ref[...], preferred_element_type=jnp.float32)
                  + b_ref[...])


def _pick_row_tile(m, cap=512):
    # Largest row tile <= cap that divides m (multiple of 8), else the whole array.
    if m <= cap:
        return m
    for t in range(cap, 7, -8):
        if m % t == 0:
            return t
    return m


def linear(x2d, w_bf16, b2d):
    m, k = x2d.shape
    n = w_bf16.shape[1]
    tm = _pick_row_tile(m)
    return pl.pallas_call(
        _linear_kernel,
        out_shape=jax.ShapeDtypeStruct((m, n), jnp.float32),
        grid=(m // tm,),
        in_specs=[pl.BlockSpec((tm, k), lambda i: (i, 0)),
                  pl.BlockSpec((k, n), lambda i: (0, 0)),
                  pl.BlockSpec((1, n), lambda i: (0, 0))],
        out_specs=pl.BlockSpec((tm, n), lambda i: (i, 0)),
        compiler_params=pltpu.CompilerParams(dimension_semantics=("parallel",)),
    )(x2d, w_bf16, b2d)


# --------------------------------------------------------------- fused layer kernel

def _encoder_layer_kernel(x_ref, wqkv_ref, bqkv_ref, wo_ref, bo_ref,
                          g1_ref, be1_ref, w1_ref, b1_ref, w2_ref, b2_ref,
                          g2_ref, be2_ref, y_ref, *rest,
                          num_heads, head_dim, eps, write_attn):
    if write_attn:
        attn_ref, vals2d_ref, merged_ref = rest
    else:
        attn_ref = None
        vals2d_ref, merged_ref = rest

    H, hd = num_heads, head_dim
    x = x_ref[0]                                            # (S, D) f32
    S, D = x.shape

    # --- fused QKV projection: ONE lane-dense (S, 3D) matmul, bf16 operands. ---
    qkv = jnp.dot(x.astype(jnp.bfloat16), wqkv_ref[...],
                  preferred_element_type=jnp.float32) + bqkv_ref[...]
    qkv_bf = qkv.astype(jnp.bfloat16)

    # Columns were permuted at prepare time to [Q_heads | K_heads | V_heads];
    # carve heads out of the result (small lane slices, one stack per tensor).
    def heads(t):                                           # -> (H, S, hd) bf16
        return jnp.stack([qkv_bf[:, t * D + h * hd: t * D + (h + 1) * hd]
                          for h in range(H)], axis=0)

    q, k, v = heads(0), heads(1), heads(2)

    # --- scaled dot-product attention (no explicit k transpose). ---
    scores = lax.dot_general(q, k, (((2,), (2,)), ((0,), (0,))),
                             preferred_element_type=jnp.float32)      # (H, S, S)
    scores = scores * (1.0 / math.sqrt(hd))
    # TODO(synk): additive attention mask not plumbed (forward uses mask=None).
    scores = scores - jnp.max(scores, axis=-1, keepdims=True)
    e = jnp.exp(scores)
    attn = e * pl.reciprocal(jnp.sum(e, axis=-1, keepdims=True), approx=True)
    if write_attn:
        attn_ref[0] = attn                                  # one store, all heads

    vals = lax.dot_general(attn.astype(jnp.bfloat16), v,
                           (((2,), (1,)), ((0,), (0,))),
                           preferred_element_type=jnp.float32)        # (H, S, hd)

    # --- PyTorch quirky merge: values(H,S,hd).reshape(S, H*hd) (NO head transpose).
    #     Stage the flat (H*S, hd) buffer, then gather its H-strided row groups into
    #     a lane-dense (S, D) buffer so the output projection is ONE K=D matmul. ---
    for h in range(H):
        vals2d_ref[pl.ds(h * S, S), :] = vals[h]
    for j in range(H):
        merged_ref[:, j * hd:(j + 1) * hd] = vals2d_ref[pl.ds(j, S, stride=H), :]
    merged_bf = merged_ref[...].astype(jnp.bfloat16)        # (S, D)

    attn_out = jnp.dot(merged_bf, wo_ref[...],
                       preferred_element_type=jnp.float32) + bo_ref[...]

    # --- residual + LayerNorm1 (f32) ---
    h1_in = attn_out + x
    mu1 = jnp.mean(h1_in, axis=-1, keepdims=True)
    var1 = jnp.mean((h1_in - mu1) ** 2, axis=-1, keepdims=True)
    h1 = g1_ref[...] * ((h1_in - mu1) * lax.rsqrt(var1 + eps)) + be1_ref[...]

    # --- position-wise FFN (relu), bf16 matmuls / f32 accumulation ---
    ff = jnp.maximum(jnp.dot(h1.astype(jnp.bfloat16), w1_ref[...],
                             preferred_element_type=jnp.float32) + b1_ref[...], 0.0)
    ff = jnp.dot(ff.astype(jnp.bfloat16), w2_ref[...],
                 preferred_element_type=jnp.float32) + b2_ref[...]

    # --- residual + LayerNorm2 (f32) ---
    z = ff + h1
    mu2 = jnp.mean(z, axis=-1, keepdims=True)
    var2 = jnp.mean((z - mu2) ** 2, axis=-1, keepdims=True)
    y_ref[0] = g2_ref[...] * ((z - mu2) * lax.rsqrt(var2 + eps)) + be2_ref[...]


def encoder_layer(x, p, num_heads, return_attention=True):
    B, S, D = x.shape
    hd = D // num_heads
    hidden = p["w1"].shape[1]

    def const_spec(shape, buffered):
        nd = len(shape)
        imap = lambda b, _nd=nd: (0,) * _nd
        if buffered:
            # Constant index map across the grid: single-buffer the weight blocks.
            return pl.BlockSpec(shape, imap, pipeline_mode=pl.Buffered(1))
        return pl.BlockSpec(shape, imap)

    def run(buffered):
        in_specs = [
            pl.BlockSpec((1, S, D), lambda b: (b, 0, 0)),            # x
            const_spec((D, 3 * D), buffered),                        # wqkv (bf16)
            const_spec((1, 3 * D), buffered),                        # bqkv
            const_spec((D, D), buffered),                            # wo (bf16)
            const_spec((1, D), buffered),                            # bo
            const_spec((1, D), buffered),                            # ln1 gamma
            const_spec((1, D), buffered),                            # ln1 beta
            const_spec((D, hidden), buffered),                       # ffn w1 (bf16)
            const_spec((1, hidden), buffered),                       # ffn b1
            const_spec((hidden, D), buffered),                       # ffn w2 (bf16)
            const_spec((1, D), buffered),                            # ffn b2
            const_spec((1, D), buffered),                            # ln2 gamma
            const_spec((1, D), buffered),                            # ln2 beta
        ]
        out_shape = [jax.ShapeDtypeStruct((B, S, D), jnp.float32)]
        out_specs = [pl.BlockSpec((1, S, D), lambda b: (b, 0, 0))]
        if return_attention:
            out_shape.append(jax.ShapeDtypeStruct((B, num_heads, S, S), jnp.float32))
            out_specs.append(pl.BlockSpec((1, num_heads, S, S),
                                          lambda b: (b, 0, 0, 0)))
        return pl.pallas_call(
            partial(_encoder_layer_kernel, num_heads=num_heads, head_dim=hd,
                    eps=1e-5, write_attn=return_attention),
            out_shape=tuple(out_shape),
            grid=(B,),
            in_specs=in_specs,
            out_specs=tuple(out_specs),
            scratch_shapes=[pltpu.VMEM((num_heads * S, hd), jnp.float32),  # staging
                            pltpu.VMEM((S, D), jnp.float32)],              # merged
            compiler_params=pltpu.CompilerParams(
                dimension_semantics=("parallel",),
                vmem_limit_bytes=48 * 1024 * 1024),
        )(x, p["wqkv"], p["bqkv"], p["wo"], p["bo"],
          p["ln1_g"], p["ln1_b"], p["w1"], p["b1"], p["w2"], p["b2"],
          p["ln2_g"], p["ln2_b"])

    try:
        outs = run(buffered=True)
    except Exception:
        # Fallback if pl.Buffered(1) is rejected by the pipeline emitter.
        outs = run(buffered=False)
    if return_attention:
        return outs[0], outs[1]
    return outs[0], None


# ----------------------------------------------------------------- param preparation

def prepare_encoder_params(params, num_heads):
    """One-time re-layout of PyTorch-layout params into kernel-friendly bf16 form."""
    D = params["w_in"].shape[1]
    hd = D // num_heads
    sqrt_D = math.sqrt(D)
    bf = jnp.bfloat16

    def qkv_permute(w, b):
        # PyTorch column order per head h is [q_h | k_h | v_h]; regroup columns to
        # [q_all_heads | k_all_heads | v_all_heads] so the kernel takes lane slices.
        wp = w.reshape(D, num_heads, 3, hd).transpose(0, 2, 1, 3).reshape(D, 3 * D)
        bp = b.reshape(num_heads, 3, hd).transpose(1, 0, 2).reshape(3 * D)
        return wp, bp

    out_features = params["w_out"].shape[1]
    n_pad = max(128, ((out_features + 127) // 128) * 128)   # lane-dense output head
    w_out_p = jnp.zeros((D, n_pad), jnp.float32).at[:, :out_features].set(params["w_out"])
    b_out_p = jnp.zeros((n_pad,), jnp.float32).at[:out_features].set(params["b_out"])

    prepared = dict(
        # sqrt(D) scale folded into the input projection (trace-time fold).
        w_in=(params["w_in"] * sqrt_D).astype(bf),
        b_in=(params["b_in"] * sqrt_D).reshape(1, -1).astype(jnp.float32),
        w_out=w_out_p.astype(bf),
        b_out=b_out_p.reshape(1, -1),
        out_features=out_features,
        layers=[])
    for p in params["layers"]:
        wqkv, bqkv = qkv_permute(p["wqkv"], p["bqkv"])
        prepared["layers"].append(dict(
            wqkv=wqkv.astype(bf), bqkv=bqkv.reshape(1, -1),
            wo=p["wo"].astype(bf), bo=p["bo"].reshape(1, -1),
            w1=p["w1"].astype(bf), b1=p["b1"].reshape(1, -1),
            w2=p["w2"].astype(bf), b2=p["b2"].reshape(1, -1),
            ln1_g=p["ln1_g"].reshape(1, -1), ln1_b=p["ln1_b"].reshape(1, -1),
            ln2_g=p["ln2_g"].reshape(1, -1), ln2_b=p["ln2_b"].reshape(1, -1)))
    return prepared


def encoder_forward(prepared, x, num_heads, n_future, return_attention=True):
    B, S, Fi = x.shape
    D = prepared["w_in"].shape[1]
    h = linear(x.reshape(B * S, Fi), prepared["w_in"], prepared["b_in"]).reshape(B, S, D)
    attention_weights = {}
    for i, p in enumerate(prepared["layers"]):
        h, attn = encoder_layer(h, p, num_heads, return_attention)
        if return_attention:
            attention_weights[f"encoder_layer{i + 1}"] = attn
    h_last = h[:, -n_future:, :]
    Bo, So, _ = h_last.shape
    out_pad = linear(h_last.reshape(Bo * So, D), prepared["w_out"], prepared["b_out"])
    nf = prepared["out_features"]
    out = out_pad[:, :nf].reshape(Bo, So, nf)
    return out, attention_weights


# -------------------------------------------------------------------- params / ref

def _init_linear(key, fan_in, fan_out):
    kw, kb = jax.random.split(key)
    bound = 1.0 / math.sqrt(fan_in)
    w = jax.random.uniform(kw, (fan_in, fan_out), jnp.float32, -bound, bound)
    b = jax.random.uniform(kb, (fan_out,), jnp.float32, -bound, bound)
    return w, b


def init_encoder_params(key, num_layers, D, H, hidden, inp_features, out_features):
    keys = jax.random.split(key, 2 + num_layers)
    w_in, b_in = _init_linear(keys[0], inp_features, D)
    w_out, b_out = _init_linear(keys[1], D, out_features)
    layers = []
    for i in range(num_layers):
        lk = jax.random.split(keys[2 + i], 4)
        wqkv, bqkv = _init_linear(lk[0], D, 3 * D)
        wo, bo = _init_linear(lk[1], D, D)
        w1, b1 = _init_linear(lk[2], D, hidden)
        w2, b2 = _init_linear(lk[3], hidden, D)
        layers.append(dict(
            wqkv=wqkv, bqkv=bqkv, wo=wo, bo=bo,
            w1=w1, b1=b1, w2=w2, b2=b2,
            ln1_g=jnp.ones((D,), jnp.float32), ln1_b=jnp.zeros((D,), jnp.float32),
            ln2_g=jnp.ones((D,), jnp.float32), ln2_b=jnp.zeros((D,), jnp.float32)))
    return dict(w_in=w_in, b_in=b_in, w_out=w_out, b_out=b_out, layers=layers)


def reference_forward(params, x, num_heads, n_future):
    # Pure-JAX reference (high precision) mirroring the PyTorch forward exactly.
    P = jax.lax.Precision.HIGHEST
    eps = 1e-5

    def ln(t, g, b):
        mu = jnp.mean(t, axis=-1, keepdims=True)
        var = jnp.mean((t - mu) ** 2, axis=-1, keepdims=True)
        return g * ((t - mu) / jnp.sqrt(var + eps)) + b

    B, S, _ = x.shape
    D = params["w_in"].shape[1]
    hd = D // num_heads
    h = (jnp.einsum("bsf,fd->bsd", x, params["w_in"], precision=P)
         + params["b_in"]) * math.sqrt(D)
    for p in params["layers"]:
        qkv = jnp.einsum("bsd,de->bse", h, p["wqkv"], precision=P) + p["bqkv"]
        qkv = qkv.reshape(B, S, num_heads, 3 * hd).transpose(0, 2, 1, 3)
        q, k, v = qkv[..., :hd], qkv[..., hd:2 * hd], qkv[..., 2 * hd:]
        scores = jnp.einsum("bhqd,bhkd->bhqk", q, k, precision=P) / math.sqrt(hd)
        attn = jax.nn.softmax(scores, axis=-1)
        vals = jnp.einsum("bhqk,bhkd->bhqd", attn, v, precision=P)
        vals = vals.reshape(B, S, D)  # same (quirky) reshape as the PyTorch code
        out = jnp.einsum("bsd,de->bse", vals, p["wo"], precision=P) + p["bo"]
        h1 = ln(out + h, p["ln1_g"], p["ln1_b"])
        ff = jax.nn.relu(jnp.einsum("bsd,dh->bsh", h1, p["w1"], precision=P) + p["b1"])
        ff = jnp.einsum("bsh,hd->bsd", ff, p["w2"], precision=P) + p["b2"]
        h = ln(ff + h1, p["ln2_g"], p["ln2_b"])
    h_last = h[:, -n_future:, :]
    return jnp.einsum("bsd,do->bso", h_last, params["w_out"], precision=P) + params["b_out"]


# --------------------------------------------------------------------------------- main

if __name__ == "__main__":
    # Small, shape-consistent configuration.
    num_layers, D, H, hidden_mlp_dim = 2, 32, 4, 64
    inp_features, out_features, n_future = 4, 3, 4
    B, S = 2, 8

    key = jax.random.PRNGKey(0)
    pkey, xkey = jax.random.split(key)
    params = init_encoder_params(pkey, num_layers, D, H, hidden_mlp_dim,
                                 inp_features, out_features)
    x = jax.random.normal(xkey, (B, S, inp_features), jnp.float32)

    prepared = prepare_encoder_params(params, num_heads=H)   # one-time re-layout
    out, attn_weights = encoder_forward(prepared, x, num_heads=H, n_future=n_future)
    out = jax.block_until_ready(out)
    for v in attn_weights.values():
        jax.block_until_ready(v)

    out_ref = reference_forward(params, x, num_heads=H, n_future=n_future)
    assert out.shape == (B, n_future, out_features), out.shape
    assert attn_weights["encoder_layer1"].shape == (B, H, S, S)
    # Tolerance loosened slightly vs a pure-f32 kernel: matmul operands are bf16
    # (f32 accumulation), per the performance review.
    assert jnp.allclose(out, out_ref, rtol=1e-1, atol=1e-1), \
        float(jnp.max(jnp.abs(out - out_ref)))

    print("KERNEL_OK")
</pallas_src>

<mosaic_0001>
module attributes {stable_mosaic.version = 11 : i64} {
  func.func @_linear_kernel(%arg0: i32, %arg1: memref<16x4xf32, #tpu.memory_space<vmem>>, %arg2: memref<4x32xbf16, #tpu.memory_space<vmem>>, %arg3: memref<1x32xf32, #tpu.memory_space<vmem>>, %arg4: memref<16x32xf32, #tpu.memory_space<vmem>>) attributes {dimension_semantics = [#tpu.dimension_semantics<parallel>], iteration_bounds = array<i64: 1>, scalar_prefetch = 0 : i64, scratch_operands = 0 : i64, tpu.core_type = #tpu.core_type<tc>, window_params = [{transform_indices = @transform_0, window_bounds = array<i64: 16, 4>}, {pipeline_mode = #tpu.pipeline_mode<synchronous>, transform_indices = @transform_1, window_bounds = array<i64: 4, 32>}, {pipeline_mode = #tpu.pipeline_mode<synchronous>, transform_indices = @transform_2, window_bounds = array<i64: 1, 32>}, {transform_indices = @transform_3, window_bounds = array<i64: 16, 32>}]} {
    %c0 = arith.constant 0 : index
    %c0_0 = arith.constant 0 : index
    %0 = vector.load %arg1[%c0, %c0_0] : memref<16x4xf32, #tpu.memory_space<vmem>>, vector<16x4xf32>
    %1 = arith.truncf %0 : vector<16x4xf32> to vector<16x4xbf16>
    %c0_1 = arith.constant 0 : index
    %c0_2 = arith.constant 0 : index
    %2 = vector.load %arg2[%c0_1, %c0_2] : memref<4x32xbf16, #tpu.memory_space<vmem>>, vector<4x32xbf16>
    %cst = arith.constant dense<0.000000e+00> : vector<16x32xf32>
    %3 = tpu.matmul %1, %2, %cst {dimension_numbers = #tpu.dot_dimension_numbers<[1], [0], [0], [1], [0, 0, 1, 1], [], []>} : vector<16x4xbf16>, vector<4x32xbf16>, vector<16x32xf32> -> vector<16x32xf32>
    %c0_3 = arith.constant 0 : index
    %c0_4 = arith.constant 0 : index
    %4 = vector.load %arg3[%c0_3, %c0_4] : memref<1x32xf32, #tpu.memory_space<vmem>>, vector<1x32xf32>
    %5 = vector.broadcast %4 : vector<1x32xf32> to vector<16x32xf32>
    %6 = arith.addf %3, %5 : vector<16x32xf32>
    %c0_5 = arith.constant 0 : index
    %c0_6 = arith.constant 0 : index
    %7 = vector.load %arg4[%c0_5, %c0_6] : memref<16x32xf32, #tpu.memory_space<vmem>>, vector<16x32xf32>
    tpu.vector_store %arg4[%c0_5, %c0_6], %6 {strides = array<i32>} : memref<16x32xf32, #tpu.memory_space<vmem>>, vector<16x32xf32>,
    return
  }
  func.func @transform_0(%arg0: i32) -> (i32, i32) {
    %c0_i32 = arith.constant 0 : i32
    %c0_i32_0 = arith.constant 0 : i32
    return %arg0, %c0_i32 : i32, i32
  }
  func.func @transform_1(%arg0: i32) -> (i32, i32) {
    %c0_i32 = arith.constant 0 : i32
    %c0_i32_0 = arith.constant 0 : i32
    %c0_i32_1 = arith.constant 0 : i32
    return %c0_i32, %c0_i32_0 : i32, i32
  }
  func.func @transform_2(%arg0: i32) -> (i32, i32) {
    %c0_i32 = arith.constant 0 : i32
    %c0_i32_0 = arith.constant 0 : i32
    %c0_i32_1 = arith.constant 0 : i32
    return %c0_i32, %c0_i32_0 : i32, i32
  }
  func.func @transform_3(%arg0: i32) -> (i32, i32) {
    %c0_i32 = arith.constant 0 : i32
    %c0_i32_0 = arith.constant 0 : i32
    return %arg0, %c0_i32 : i32, i32
  }
}

</mosaic_0001>

<bundles_post_ra>
// kernel: tpu_custom_call.1
= control target key start
LH: loop header
LB: loop body
LE: loop exit
PB: predicated region body
PF: predicated region fallthrough
CT: control target
= control target key end

     0   :  { %vm31_vm0 = vcmask 1041408   ;;  %v132_v2 = vmov 0.0   ;;  %vm133_vm1 = vmmov 0   ;;  %vm27_vm2 = vcmask 31744   ;;  %s172_s0 = inlined_call_operand.vmem [shape: f32[16,4], index: 0, kind: input, shape index: {}]   ;;  %s173_s1 = inlined_call_operand.vmem [shape: bf16[4,32], index: 1, kind: input, shape index: {}]   ;;  %s174_s2 = inlined_call_operand.vmem [shape: f32[1,32], index: 2, kind: input, shape index: {}]   ;;  %s175_s3 = inlined_call_operand.hbm [shape: f32[16,32], index: 3, kind: output, shape index: {}]  }
   0x1   :  { %v19_v0 = vld [vmem:[%s173_s1] sm:$0x3]  ;;  %99 = vmatprep.subr.bf16.mxu0 %v132_v2  ;;  %101 = vmatprep.mubr.msk.bf16.mxu0 %vm133_vm1, %v132_v2  ;;  %v17_v4 = vld [vmem:[%s172_s0 + $0x8] sm:$0xff] }
   0x2   :  { %v16_v1 = vld [vmem:[%s172_s0] sm:$0xff]  ;;  %v33_v3 = vsel %vm31_vm0, %v19_v0, 0 }
   0x3   :  { %100 = vmatpush3.bf16.msra.mxu0 %v33_v3  ;;  %v18_v5 = vpack.c.bf16 %v17_v4, %v16_v1 }
   0x4   :  { %8 = vsyncpa [#allocation3], 0  ;;  %v95_v6 = vld [vmem:[%s174_s2] ss:$0 sm:$0xff]  ;;  %vm76_vm3 = vcmask 261120   ;;  %s134_s19 = smov [#allocation2]  }
   0x5   :  { %s84_s20 = sshll.u32 %s134_s19, 4  ;;  %s85_s20 = int_to_ptr.vmem [resolvable:$true] %s84_s20 }
   0x6   :  { %102 = vmatmul.mubr.msk.bf16.vlgmr.msra.gmra.mxu0 %vm27_vm2, %v18_v5  ;;  %s110_s0 = scalar_lea.vmem %s85_s20, 256  ;;  %p115_p1 = scmp.lt.s32.totalorder %s85_s20, %s85_s20 }
   0x7   :  { %p111_p0 = scmp.ne.s32.totalorder %s85_s20, %s110_s0  ;;  %p116_p2 = scmp.lt.s32.totalorder %s110_s0, %s110_s0 }
   0x9   :  { %p117_p3 = por %p116_p2, %p115_p1 }
   0xb   :  { %p118_p4 = pnand %p117_p3, %p111_p0 }
  0xc6   :  { %v69_v7 = vpop.f32.mrf.mxu0 }
  0xc7   :  { %v70_v8 = vadd.f32 %v95_v6, %v69_v7 }
  0xc8   :  { %v103_v9 = vpop.f32.mrf.mxu0 }
  0xc9   :  { %77 = vst.msk [vmem:[#allocation2] sm:$0xff] %vm76_vm3, %v70_v8 }
  0xca   :  { %v72_v10 = vpop.f32.mrf.mxu0 }
  0xcb   :  { %v73_v11 = vadd.f32 %v95_v6, %v72_v10 }
  0xcc   :  { %v104_v12 = vpop.f32.mrf.mxu0 }
  0xcd   :  { %78 = vst.msk [vmem:[#allocation2 + $0x8] sm:$0xff] %vm76_vm3, %v73_v11 }
  0xce   :  { %121 = shalt.err (!%p118_p4)
}
  0xcf   :  { %s135_s2 = smov 128   ;;  %s136_s21 = smov 8  }
  0xd0   :  { %90 = dma.vmem_to_hbm [thread:$0]  %s85_s20, 256, %s175_s3, [#allocation3], %s135_s2, %s135_s2, %s136_s21  }
  0xd1   :  { %130 = dma.done.wait [#allocation3], 256  }
  0xd2   :  { %131 = vsyncadd [#allocation3], 4294967040 }
  0xd3   :  { %94 = vsyncpa [#allocation3], 1 }

</bundles_post_ra>
